<compile_context>
chip_gen: v5e
topology: v5e:2x2
jax: 0.10.0
libtpu: 0.0.40
codegen_flags: <defaults>
</compile_context>

<pallas_src>
import jax
import jax.numpy as jnp
from jax.experimental import pallas as pl
from jax.experimental.pallas import tpu as pltpu

_LANE = 128      # vreg lane count
_SUBLANE = 8     # f32 sublane count


def _round_up(n, m):
    return ((n + m - 1) // m) * m


# ----------------------------------------------------------------------------
# Packing (hoisted out of the forward: call once per (fast-)weight update)
# ----------------------------------------------------------------------------
def pack_params(params):
    """Pack (w1,b1,w2,b2,w3,b3,w4,b4) into ONE lane-dense f32 slab + layout.

    wi is [in_dim, out_dim] (transpose of PyTorch's nn.Linear weight), bi is
    [out_dim] or [1, out_dim].  Zero padding is mathematically exact: padded
    weight columns / bias entries produce zero activations, padded weight rows
    multiply those zero activation columns.
    """
    w1, b1, w2, b2, w3, b3, w4, b4 = params
    ws = [w1, w2, w3, w4]
    bs = [jnp.reshape(jnp.asarray(b), (1, -1)) for b in (b1, b2, b3, b4)]

    in_f = w1.shape[0]
    outs = tuple(w.shape[1] for w in ws)                   # h1, h2, h3, out_f
    pouts = tuple(_round_up(o, _LANE) for o in outs)       # lane-padded N dims
    # K dims per layer: layer 1 consumes the real input width; layers 2-4
    # consume the lane-padded activation of the previous layer.
    kdims = (in_f, pouts[0], pouts[1], pouts[2])
    width = max(pouts)

    # Row layout: [w1 | w2 | w3 | w4 | b1 | b2 | b3 | b4], every block starting
    # on a sublane-aligned row; biases get 8 rows each (row 0 holds the data).
    w_rows = (_round_up(in_f, _SUBLANE), pouts[0], pouts[1], pouts[2])
    w_offs, off = [], 0
    for r in w_rows:
        w_offs.append(off)
        off += r
    b_offs = []
    for _ in range(4):
        b_offs.append(off)
        off += _SUBLANE
    rows = _round_up(off, _SUBLANE)

    slab = jnp.zeros((rows, width), jnp.float32)
    for w, o in zip(ws, w_offs):
        slab = slab.at[o:o + w.shape[0], :w.shape[1]].set(w.astype(jnp.float32))
    for b, o in zip(bs, b_offs):
        slab = slab.at[o:o + 1, :b.shape[1]].set(b.astype(jnp.float32))

    layout = dict(in_f=in_f, outs=outs, pouts=pouts, kdims=kdims,
                  w_offs=tuple(w_offs), b_offs=tuple(b_offs))
    return slab, layout


# ----------------------------------------------------------------------------
# Kernel
# ----------------------------------------------------------------------------
def _make_kernel(layout, compute_dtype, out_f):
    in_f = layout["in_f"]
    kdims = layout["kdims"]
    pouts = layout["pouts"]
    w_offs = layout["w_offs"]
    b_offs = layout["b_offs"]

    def kernel(x_ref, p_ref, o_ref):
        # Whole 4-layer forward on one batch tile.  All per-layer weight views
        # are static, tile-aligned slices of the resident slab.
        h = x_ref[...].astype(compute_dtype)
        for l in range(4):
            k, n = kdims[l], pouts[l]
            w = p_ref[w_offs[l]:w_offs[l] + k, 0:n].astype(compute_dtype)
            b = p_ref[b_offs[l]:b_offs[l] + 1, 0:n]        # f32 bias, exact
            h = jnp.dot(h, w, preferred_element_type=jnp.float32) + b
            if l < 3:
                h = jnp.maximum(h, 0.0).astype(compute_dtype)
        # Final layer: store only the real out_features lanes (masked store on
        # the last layer only; avoids 32x padded HBM writeback).
        o_ref[...] = h[:, :out_f].astype(o_ref.dtype)

    return kernel


# ----------------------------------------------------------------------------
# Wrapper
# ----------------------------------------------------------------------------
def maml_forward(x, packed, *, tile_b=None, compute_dtype=jnp.float32):
    """Forward pass.  `packed` is the result of pack_params(params).

    In a real MAML loop, wrap the adaptation/meta step in jax.jit so this
    traces (and compiles) once per shape.
    """
    slab, layout = packed
    B, in_f = x.shape
    assert in_f == layout["in_f"], "x feature dim does not match packed weights"
    out_f = layout["outs"][3]

    # --- Batch tiling: one step for tiny batches; >=2 parallel steps otherwise
    # (v7x second TensorCore), capped at 512-row tiles.
    if tile_b is None:
        if B <= 128:
            tile_b = B
        else:
            tile_b = min(512, (B + 1) // 2)
    tile_b = _round_up(max(1, min(tile_b, B)), _SUBLANE)
    Bp = _round_up(B, tile_b)
    xp = x if Bp == B else jnp.pad(x, ((0, Bp - B), (0, 0)))
    grid = (Bp // tile_b,)

    kdims, pouts = layout["kdims"], layout["pouts"]
    flops = 2 * Bp * sum(k * n for k, n in zip(kdims, pouts))
    bytes_accessed = (xp.size * xp.dtype.itemsize
                      + slab.size * slab.dtype.itemsize
                      + Bp * out_f * xp.dtype.itemsize)

    rows, width = slab.shape
    kernel = _make_kernel(layout, compute_dtype, out_f)

    out = pl.pallas_call(
        kernel,
        out_shape=jax.ShapeDtypeStruct((Bp, out_f), x.dtype),
        grid_spec=pl.GridSpec(
            grid=grid,
            in_specs=[
                pl.BlockSpec((tile_b, in_f), lambda i: (i, 0)),   # x batch tile
                pl.BlockSpec((rows, width), lambda i: (0, 0)),    # packed slab,
                                                                  # resident (constant index)
            ],
            out_specs=pl.BlockSpec((tile_b, out_f), lambda i: (i, 0)),
        ),
        compiler_params=pltpu.CompilerParams(
            dimension_semantics=("parallel",)),
        cost_estimate=pl.CostEstimate(
            flops=flops, transcendentals=0, bytes_accessed=bytes_accessed),
    )(xp, slab)

    return out if Bp == B else out[:B]


# ----------------------------------------------------------------------------
# Reference / init (pure JAX, for validation)
# ----------------------------------------------------------------------------
def init_params(key, in_features, hidden_features, out_features):
    """Deterministic init mimicking nn.Linear's default U(-1/sqrt(fan_in), +)."""
    dims = [
        (in_features, hidden_features),
        (hidden_features, hidden_features // 4),
        (hidden_features // 4, hidden_features // 8),
        (hidden_features // 8, out_features),
    ]
    params = []
    for fan_in, fan_out in dims:
        key, kw, kb = jax.random.split(key, 3)
        bound = 1.0 / jnp.sqrt(fan_in)
        # stored as [in, out] (transpose of PyTorch's [out, in])
        w = jax.random.uniform(kw, (fan_in, fan_out), jnp.float32, -bound, bound)
        b = jax.random.uniform(kb, (1, fan_out), jnp.float32, -bound, bound)
        params += [w, b]
    return tuple(params)


def reference_forward(x, params):
    w1, b1, w2, b2, w3, b3, w4, b4 = params
    h = jnp.maximum(x @ w1 + b1, 0.0)
    h = jnp.maximum(h @ w2 + b2, 0.0)
    h = jnp.maximum(h @ w3 + b3, 0.0)
    return h @ w4 + b4


if __name__ == "__main__":
    in_features, hidden_features, out_features = 16, 32, 4
    batch = 16

    key = jax.random.PRNGKey(0)
    key, kx = jax.random.split(key)
    x = jax.random.normal(kx, (batch, in_features), jnp.float32)
    params = init_params(key, in_features, hidden_features, out_features)

    # Pack once (per fast-weight update), forward many times.
    packed = pack_params(params)

    # f32 path (bit-faithful to the PyTorch module).
    y = jax.block_until_ready(maml_forward(x, packed))
    y_ref = reference_forward(x, params)
    assert y.shape == (batch, out_features)
    assert jnp.allclose(y, y_ref, atol=1e-5, rtol=1e-5), "f32 mismatch vs reference"

    # bf16 matmul-operand path (MXU-native on v5e/v6e/v7x), f32 accumulate/bias.
    y_bf16 = jax.block_until_ready(
        maml_forward(x, packed, compute_dtype=jnp.bfloat16))
    assert jnp.allclose(y_bf16, y_ref, atol=5e-2, rtol=5e-2), "bf16 mismatch vs reference"

    # Larger, non-aligned batch exercising batch padding + multi-step parallel grid.
    xb = jax.random.normal(jax.random.PRNGKey(1), (300, in_features), jnp.float32)
    yb = jax.block_until_ready(maml_forward(xb, packed))
    assert jnp.allclose(yb, reference_forward(xb, params), atol=1e-4, rtol=1e-4), \
        "large-batch mismatch vs reference"

    print("KERNEL_OK")
</pallas_src>

<mosaic_0001>
module attributes {stable_mosaic.version = 11 : i64} {
  func.func @kernel(%arg0: i32, %arg1: memref<16x16xf32, #tpu.memory_space<vmem>>, %arg2: memref<432x128xf32, #tpu.memory_space<vmem>>, %arg3: memref<16x4xf32, #tpu.memory_space<vmem>>) attributes {dimension_semantics = [#tpu.dimension_semantics<parallel>], iteration_bounds = array<i64: 1>, scalar_prefetch = 0 : i64, scratch_operands = 0 : i64, tpu.core_type = #tpu.core_type<tc>, window_params = [{transform_indices = @transform_0, window_bounds = array<i64: 16, 16>}, {pipeline_mode = #tpu.pipeline_mode<synchronous>, transform_indices = @transform_1, window_bounds = array<i64: 432, 128>}, {transform_indices = @transform_2, window_bounds = array<i64: 16, 4>}]} {
    %c0 = arith.constant 0 : index
    %c0_0 = arith.constant 0 : index
    %0 = vector.load %arg1[%c0, %c0_0] : memref<16x16xf32, #tpu.memory_space<vmem>>, vector<16x16xf32>
    %c0_1 = arith.constant 0 : index
    %c0_2 = arith.constant 0 : index
    %1 = vector.load %arg2[%c0_1, %c0_2] : memref<432x128xf32, #tpu.memory_space<vmem>>, vector<16x128xf32>
    %c400 = arith.constant 400 : index
    %c0_3 = arith.constant 0 : index
    %2 = vector.load %arg2[%c400, %c0_3] : memref<432x128xf32, #tpu.memory_space<vmem>>, vector<1x128xf32>
    %cst = arith.constant dense<0.000000e+00> : vector<16x128xf32>
    %3 = tpu.matmul %0, %1, %cst {dimension_numbers = #tpu.dot_dimension_numbers<[1], [0], [0], [1], [0, 0, 1, 1], [], []>} : vector<16x16xf32>, vector<16x128xf32>, vector<16x128xf32> -> vector<16x128xf32>
    %4 = vector.broadcast %2 : vector<1x128xf32> to vector<16x128xf32>
    %5 = arith.addf %3, %4 : vector<16x128xf32>
    %cst_4 = arith.constant 0.000000e+00 : f32
    %6 = vector.broadcast %cst_4 : f32 to vector<16x128xf32>
    %7 = arith.maximumf %5, %6 : vector<16x128xf32>
    %c16 = arith.constant 16 : index
    %c0_5 = arith.constant 0 : index
    %8 = vector.load %arg2[%c16, %c0_5] : memref<432x128xf32, #tpu.memory_space<vmem>>, vector<128x128xf32>
    %c408 = arith.constant 408 : index
    %c0_6 = arith.constant 0 : index
    %9 = vector.load %arg2[%c408, %c0_6] : memref<432x128xf32, #tpu.memory_space<vmem>>, vector<1x128xf32>
    %cst_7 = arith.constant dense<0.000000e+00> : vector<16x128xf32>
    %10 = tpu.matmul %7, %8, %cst_7 {dimension_numbers = #tpu.dot_dimension_numbers<[1], [0], [0], [1], [0, 0, 1, 1], [], []>} : vector<16x128xf32>, vector<128x128xf32>, vector<16x128xf32> -> vector<16x128xf32>
    %11 = vector.broadcast %9 : vector<1x128xf32> to vector<16x128xf32>
    %12 = arith.addf %10, %11 : vector<16x128xf32>
    %cst_8 = arith.constant 0.000000e+00 : f32
    %13 = vector.broadcast %cst_8 : f32 to vector<16x128xf32>
    %14 = arith.maximumf %12, %13 : vector<16x128xf32>
    %c144 = arith.constant 144 : index
    %c0_9 = arith.constant 0 : index
    %15 = vector.load %arg2[%c144, %c0_9] : memref<432x128xf32, #tpu.memory_space<vmem>>, vector<128x128xf32>
    %c416 = arith.constant 416 : index
    %c0_10 = arith.constant 0 : index
    %16 = vector.load %arg2[%c416, %c0_10] : memref<432x128xf32, #tpu.memory_space<vmem>>, vector<1x128xf32>
    %cst_11 = arith.constant dense<0.000000e+00> : vector<16x128xf32>
    %17 = tpu.matmul %14, %15, %cst_11 {dimension_numbers = #tpu.dot_dimension_numbers<[1], [0], [0], [1], [0, 0, 1, 1], [], []>} : vector<16x128xf32>, vector<128x128xf32>, vector<16x128xf32> -> vector<16x128xf32>
    %18 = vector.broadcast %16 : vector<1x128xf32> to vector<16x128xf32>
    %19 = arith.addf %17, %18 : vector<16x128xf32>
    %cst_12 = arith.constant 0.000000e+00 : f32
    %20 = vector.broadcast %cst_12 : f32 to vector<16x128xf32>
    %21 = arith.maximumf %19, %20 : vector<16x128xf32>
    %c272 = arith.constant 272 : index
    %c0_13 = arith.constant 0 : index
    %22 = vector.load %arg2[%c272, %c0_13] : memref<432x128xf32, #tpu.memory_space<vmem>>, vector<128x128xf32>
    %c424 = arith.constant 424 : index
    %c0_14 = arith.constant 0 : index
    %23 = vector.load %arg2[%c424, %c0_14] : memref<432x128xf32, #tpu.memory_space<vmem>>, vector<1x128xf32>
    %cst_15 = arith.constant dense<0.000000e+00> : vector<16x128xf32>
    %24 = tpu.matmul %21, %22, %cst_15 {dimension_numbers = #tpu.dot_dimension_numbers<[1], [0], [0], [1], [0, 0, 1, 1], [], []>} : vector<16x128xf32>, vector<128x128xf32>, vector<16x128xf32> -> vector<16x128xf32>
    %25 = vector.broadcast %23 : vector<1x128xf32> to vector<16x128xf32>
    %26 = arith.addf %24, %25 : vector<16x128xf32>
    %27 = vector.extract_strided_slice %26 {offsets = [0, 0], sizes = [16, 4], strides = [1, 1]} : vector<16x128xf32> to vector<16x4xf32>
    %c0_16 = arith.constant 0 : index
    %c0_17 = arith.constant 0 : index
    %28 = vector.load %arg3[%c0_16, %c0_17] : memref<16x4xf32, #tpu.memory_space<vmem>>, vector<16x4xf32>
    tpu.vector_store %arg3[%c0_16, %c0_17], %27 {strides = array<i32>} : memref<16x4xf32, #tpu.memory_space<vmem>>, vector<16x4xf32>,
    return
  }
  func.func @transform_0(%arg0: i32) -> (i32, i32) {
    %c0_i32 = arith.constant 0 : i32
    %c0_i32_0 = arith.constant 0 : i32
    return %arg0, %c0_i32 : i32, i32
  }
  func.func @transform_1(%arg0: i32) -> (i32, i32) {
    %c0_i32 = arith.constant 0 : i32
    %c0_i32_0 = arith.constant 0 : i32
    %c0_i32_1 = arith.constant 0 : i32
    return %c0_i32, %c0_i32_0 : i32, i32
  }
  func.func @transform_2(%arg0: i32) -> (i32, i32) {
    %c0_i32 = arith.constant 0 : i32
    %c0_i32_0 = arith.constant 0 : i32
    return %arg0, %c0_i32 : i32, i32
  }
}

</mosaic_0001>

<bundles_post_ra>
// kernel: tpu_custom_call.1
= control target key start
LH: loop header
LB: loop body
LE: loop exit
PB: predicated region body
PF: predicated region fallthrough
CT: control target
= control target key end

     0   :  { %7 = vsyncpa [#allocation3], 0  ;;  %s328_s0 = inlined_call_operand.hbm [shape: f32[16,16], index: 0, kind: input, shape index: {}]   ;;  %s329_s1 = inlined_call_operand.hbm [shape: f32[432,128], index: 1, kind: input, shape index: {}]   ;;  %s330_s2 = inlined_call_operand.vmem [shape: f32[16,4], index: 2, kind: output, shape index: {}]  }
   0x1   :  { %s13_s11 = sshll.u32 %s328_s0, 4  ;;  %s14_s11 = int_to_ptr.hbm [resolvable:$true] %s13_s11 }
   0x2   :  { %8 = vsyncpa [#allocation5], 0  ;;  %s295_s12 = smov [#allocation2]   ;;  %s26_s16 = sshll.u32 %s329_s1, 4  ;;  %s27_s16 = int_to_ptr.hbm [resolvable:$true] %s26_s16 }
   0x3   :  { %s15_s13 = sshll.u32 %s295_s12, 4  ;;  %s296_s17 = smov 128   ;;  %s16_s13 = int_to_ptr.vmem [resolvable:$true] %s15_s13 }
   0x4   :  { %s297_s18 = smov 8   ;;  %s298_s19 = smov [#allocation4]  }
   0x5   :  { %21 = dma.hbm_to_vmem [thread:$0]  %s14_s11, 256, %s16_s13, [#allocation3], %s296_s17, %s296_s17, %s297_s18  }
   0x6   :  { %s28_s20 = sshll.u32 %s298_s19, 4  ;;  %s29_s20 = int_to_ptr.vmem [resolvable:$true] %s28_s20 }
   0x7   :  { %34 = dma.hbm_to_vmem [thread:$0]  %s27_s16, 6912, %s29_s20, [#allocation5], %s296_s17, %s296_s17, %s297_s18  }
   0x8   :  { %291 = dma.done.wait [#allocation3], 256  }
   0x9   :  { %292 = vsyncadd [#allocation3], 4294967040 }
   0xa   :  { %293 = dma.done.wait [#allocation5], 6912  }
   0xb   :  { %294 = vsyncadd [#allocation5], 4294960384  ;;  %v46_v0 = vld [vmem:[#allocation4 + $0x8] sm:$0xff]  ;;  %v45_v1 = vld [vmem:[#allocation4] sm:$0xff]  ;;  %vm49_vm0 = vcmask 130048   ;;  %vm208_vm1 = vcmask 31744  }
   0xc   :  { %70 = vmatpush.msra.mxu0 %v46_v0  ;;  %v43_v2 = vld [vmem:[#allocation2] sm:$0xff]  ;;  %v96_v3 = vld [vmem:[#allocation4 + $0x88] sm:$0xff]  ;;  %v95_v4 = vld [vmem:[#allocation4 + $0x80] sm:$0xff] }
   0xd   :  { %219 = vmatpush.msra.mxu1 %v96_v3  ;;  %v94_v5 = vld [vmem:[#allocation4 + $0x78] sm:$0xff]  ;;  %v93_v6 = vld [vmem:[#allocation4 + $0x70] sm:$0xff]  ;;  %v92_v8 = vld [vmem:[#allocation4 + $0x68] sm:$0xff] }
   0xe   :  { %71 = vmatpush.msra.mxu0 %v45_v1  ;;  %v44_v7 = vld [vmem:[#allocation2 + $0x8] sm:$0xff]  ;;  %v91_v9 = vld [vmem:[#allocation4 + $0x60] sm:$0xff]  ;;  %v89_v11 = vld [vmem:[#allocation4 + $0x50] sm:$0xff] }
   0xf   :  { %217 = vmatmul.msk.f32.vlgmr.msra.gmra.mxu0 %vm49_vm0, %v43_v2  ;;  %220 = vmatpush.msra.mxu1 %v95_v4  ;;  %v90_v10 = vld [vmem:[#allocation4 + $0x58] sm:$0xff]  ;;  %v88_v12 = vld [vmem:[#allocation4 + $0x48] sm:$0xff]  ;;  %v87_v13 = vld [vmem:[#allocation4 + $0x40] sm:$0xff] }
  0x10   :  { %99 = vmatpush.msrb.mxu0 %v96_v3  ;;  %v86_v14 = vld [vmem:[#allocation4 + $0x38] sm:$0xff]  ;;  %v85_v15 = vld [vmem:[#allocation4 + $0x30] sm:$0xff]  ;;  %v84_v16 = vld [vmem:[#allocation4 + $0x28] sm:$0xff] }
  0x11   :  { %221 = vmatpush.msra.mxu1 %v94_v5  ;;  %v83_v17 = vld [vmem:[#allocation4 + $0x20] sm:$0xff]  ;;  %v82_v18 = vld [vmem:[#allocation4 + $0x18] sm:$0xff]  ;;  %v81_v19 = vld [vmem:[#allocation4 + $0x10] sm:$0xff] }
  0x12   :  { %100 = vmatpush.msrb.mxu0 %v95_v4  ;;  %v139_v20 = vld [vmem:[#allocation4 + $0x108] sm:$0xff]  ;;  %v138_v21 = vld [vmem:[#allocation4 + $0x100] sm:$0xff]  ;;  %v137_v22 = vld [vmem:[#allocation4 + $0xf8] sm:$0xff] }
  0x13   :  { %222 = vmatpush.msra.mxu1 %v93_v6  ;;  %142 = vmatpush.msra.mxu2 %v139_v20  ;;  %v136_v23 = vld [vmem:[#allocation4 + $0xf0] sm:$0xff]  ;;  %v135_v24 = vld [vmem:[#allocation4 + $0xe8] sm:$0xff]  ;;  %v134_v25 = vld [vmem:[#allocation4 + $0xe0] sm:$0xff] }
  0x14   :  { %101 = vmatpush.msrb.mxu0 %v94_v5  ;;  %v133_v26 = vld [vmem:[#allocation4 + $0xd8] sm:$0xff]  ;;  %v132_v27 = vld [vmem:[#allocation4 + $0xd0] sm:$0xff]  ;;  %v131_v28 = vld [vmem:[#allocation4 + $0xc8] sm:$0xff] }
  0x15   :  { %223 = vmatpush.msra.mxu1 %v92_v8  ;;  %143 = vmatpush.msra.mxu2 %v138_v21  ;;  %v239_v29 = vld [vmem:[#allocation4 + $0x190] ss:$0 sm:$0xff]  ;;  %v130_v30 = vld [vmem:[#allocation4 + $0xc0] sm:$0xff]  ;;  %v129_v31 = vld [vmem:[#allocation4 + $0xb8] sm:$0xff] }
  0x16   :  { %102 = vmatpush.msrb.mxu0 %v93_v6  ;;  %v128_v34 = vld [vmem:[#allocation4 + $0xb0] sm:$0xff]  ;;  %v127_v36 = vld [vmem:[#allocation4 + $0xa8] sm:$0xff]  ;;  %v126_v40 = vld [vmem:[#allocation4 + $0xa0] sm:$0xff] }
  0x17   :  { %218 = vmatmul.msk.f32.gmra.mxu0 %vm49_vm0, %v44_v7  ;;  %224 = vmatpush.msra.mxu1 %v91_v9  ;;  %v125_v41 = vld [vmem:[#allocation4 + $0x98] sm:$0xff]  ;;  %v124_v42 = vld [vmem:[#allocation4 + $0x90] sm:$0xff]  ;;  %v182_v43 = vld [vmem:[#allocation4 + $0x188] sm:$0xff] }
  0x18   :  { %103 = vmatpush.msrb.mxu0 %v92_v8  ;;  %144 = vmatpush.msra.mxu2 %v137_v22  ;;  %v181_v44 = vld [vmem:[#allocation4 + $0x180] sm:$0xff]  ;;  %v180_v45 = vld [vmem:[#allocation4 + $0x178] sm:$0xff]  ;;  %v179_v46 = vld [vmem:[#allocation4 + $0x170] sm:$0xff] }
  0x19   :  { %225 = vmatpush.msra.mxu1 %v90_v10  ;;  %185 = vmatpush.msra.mxu3 %v182_v43  ;;  %v178_v47 = vld [vmem:[#allocation4 + $0x168] sm:$0xff]  ;;  %v177_v48 = vld [vmem:[#allocation4 + $0x160] sm:$0xff]  ;;  %v176_v49 = vld [vmem:[#allocation4 + $0x158] sm:$0xff] }
  0x1a   :  { %104 = vmatpush.msrb.mxu0 %v91_v9  ;;  %145 = vmatpush.msra.mxu2 %v136_v23  ;;  %v175_v50 = vld [vmem:[#allocation4 + $0x150] sm:$0xff]  ;;  %v174_v51 = vld [vmem:[#allocation4 + $0x148] sm:$0xff]  ;;  %v240_v52 = vld [vmem:[#allocation4 + $0x198] ss:$0 sm:$0xff] }
  0x1b   :  { %226 = vmatpush.msra.mxu1 %v89_v11  ;;  %186 = vmatpush.msra.mxu3 %v181_v44  ;;  %v173_v53 = vld [vmem:[#allocation4 + $0x140] sm:$0xff]  ;;  %v172_v54 = vld [vmem:[#allocation4 + $0x138] sm:$0xff]  ;;  %v171_v57 = vld [vmem:[#allocation4 + $0x130] sm:$0xff] }
  0x1c   :  { %105 = vmatpush.msrb.mxu0 %v90_v10  ;;  %146 = vmatpush.msra.mxu2 %v135_v24  ;;  %v170_v59 = vld [vmem:[#allocation4 + $0x128] sm:$0xff]  ;;  %v169_v63 = vld [vmem:[#allocation4 + $0x120] sm:$0xff]  ;;  %v168_v0 = vld [vmem:[#allocation4 + $0x118] sm:$0xff] }
  0x1d   :  { %227 = vmatpush.msra.mxu1 %v88_v12  ;;  %187 = vmatpush.msra.mxu3 %v180_v45  ;;  %v167_v1 = vld [vmem:[#allocation4 + $0x110] sm:$0xff]  ;;  %v241_v2 = vld [vmem:[#allocation4 + $0x1a0] ss:$0 sm:$0xff]  ;;  %v242_v9 = vld [vmem:[#allocation4 + $0x1a8] ss:$0 sm:$0xff] }
  0x1e   :  { %106 = vmatpush.msrb.mxu0 %v89_v11  ;;  %147 = vmatpush.msra.mxu2 %v134_v25 }
  0x1f   :  { %228 = vmatpush.msra.mxu1 %v87_v13  ;;  %188 = vmatpush.msra.mxu3 %v179_v46 }
  0x20   :  { %107 = vmatpush.msrb.mxu0 %v88_v12  ;;  %148 = vmatpush.msra.mxu2 %v133_v26 }
  0x21   :  { %229 = vmatpush.msra.mxu1 %v86_v14  ;;  %189 = vmatpush.msra.mxu3 %v178_v47 }
  0x22   :  { %108 = vmatpush.msrb.mxu0 %v87_v13  ;;  %149 = vmatpush.msra.mxu2 %v132_v27 }
  0x23   :  { %230 = vmatpush.msra.mxu1 %v85_v15  ;;  %190 = vmatpush.msra.mxu3 %v177_v48 }
  0x24   :  { %109 = vmatpush.msrb.mxu0 %v86_v14  ;;  %150 = vmatpush.msra.mxu2 %v131_v28 }
  0x25   :  { %231 = vmatpush.msra.mxu1 %v84_v16  ;;  %191 = vmatpush.msra.mxu3 %v176_v49 }
  0x26   :  { %110 = vmatpush.msrb.mxu0 %v85_v15  ;;  %151 = vmatpush.msra.mxu2 %v130_v30 }
  0x27   :  { %232 = vmatpush.msra.mxu1 %v83_v17  ;;  %192 = vmatpush.msra.mxu3 %v175_v50 }
  0x28   :  { %111 = vmatpush.msrb.mxu0 %v84_v16  ;;  %152 = vmatpush.msra.mxu2 %v129_v31 }
  0x29   :  { %233 = vmatpush.msra.mxu1 %v82_v18  ;;  %193 = vmatpush.msra.mxu3 %v174_v51 }
  0x2a   :  { %112 = vmatpush.msrb.mxu0 %v83_v17  ;;  %153 = vmatpush.msra.mxu2 %v128_v34 }
  0x2b   :  { %234 = vmatpush.msra.mxu1 %v81_v19  ;;  %194 = vmatpush.msra.mxu3 %v173_v53 }
  0x2c   :  { %113 = vmatpush.msrb.mxu0 %v82_v18  ;;  %154 = vmatpush.msra.mxu2 %v127_v36 }
  0x2d   :  { %195 = vmatpush.msra.mxu3 %v172_v54 }
  0x2e   :  { %114 = vmatpush.msrb.mxu0 %v81_v19  ;;  %155 = vmatpush.msra.mxu2 %v126_v40 }
  0x2f   :  { %196 = vmatpush.msra.mxu3 %v171_v57 }
  0x30   :  { %156 = vmatpush.msra.mxu2 %v125_v41 }
  0x31   :  { %197 = vmatpush.msra.mxu3 %v170_v59 }
  0x32   :  { %157 = vmatpush.msra.mxu2 %v124_v42 }
  0x33   :  { %198 = vmatpush.msra.mxu3 %v169_v63 }
  0x35   :  { %199 = vmatpush.msra.mxu3 %v168_v0 }
  0x37   :  { %200 = vmatpush.msra.mxu3 %v167_v1 }
  0x8c   :  { %v73_v32 = vpop.f32.mrf.mxu0 }
  0x8d   :  { %v74_v33 = vadd.f32 %v239_v29, %v73_v32 }
  0x8f   :  { %v79_v35 = vmax.f32 %v74_v33, 0.0 }
  0x91   :  { %115 = vmatmul.f32.vlgmr.msrb.gmra.mxu0 %v79_v35 }
  0x94   :  { %v76_v37 = vpop.f32.mrf.mxu0 }
  0x95   :  { %v77_v38 = vadd.f32 %v239_v29, %v76_v37 }
  0x97   :  { %v80_v39 = vmax.f32 %v77_v38, 0.0 }
  0x99   :  { %118 = vmatmul.f32.vlgmr.msra.gmra.mxu1 %v80_v39 }
 0x10e   :  { %v116_v55 = vpop.f32.mrf.mxu0 }
 0x10f   :  { %v117_v56 = vadd.f32 %v240_v52, %v116_v55 }
 0x111   :  { %v122_v58 = vmax.f32 %v117_v56, 0.0 }
 0x113   :  { %158 = vmatmul.f32.vlgmr.msra.gmra.mxu2 %v122_v58 }
 0x116   :  { %v119_v60 = vpop.f32.mrf.mxu1 }
 0x117   :  { %v120_v61 = vadd.f32 %v240_v52, %v119_v60 }
 0x119   :  { %v123_v62 = vmax.f32 %v120_v61, 0.0 }
 0x11b   :  { %161 = vmatmul.f32.gmra.mxu2 %v123_v62 }
 0x196   :  { %v159_v3 = vpop.f32.mrf.mxu2 }
 0x197   :  { %v160_v4 = vadd.f32 %v241_v2, %v159_v3 }
 0x199   :  { %v165_v5 = vmax.f32 %v160_v4, 0.0 }
 0x19b   :  { %201 = vmatmul.f32.vlgmr.msra.gmra.mxu3 %v165_v5 }
 0x19e   :  { %v162_v6 = vpop.f32.mrf.mxu2 }
 0x19f   :  { %v163_v7 = vadd.f32 %v241_v2, %v162_v6 }
 0x1a1   :  { %v166_v8 = vmax.f32 %v163_v7, 0.0 }
 0x1a3   :  { %204 = vmatmul.f32.gmra.mxu3 %v166_v8 }
 0x21e   :  { %v202_v10 = vpop.f32.mrf.mxu3 }
 0x21f   :  { %v203_v11 = vadd.f32 %v242_v9, %v202_v10 }
 0x221   :  { %209 = vst.msk [vmem:[%s330_s2] sm:$0xff] %vm208_vm1, %v203_v11 }
 0x226   :  { %v205_v12 = vpop.f32.mrf.mxu3 }
 0x227   :  { %v206_v13 = vadd.f32 %v242_v9, %v205_v12 }
 0x229   :  { %210 = vst.msk [vmem:[%s330_s2 + $0x8] sm:$0xff] %vm208_vm1, %v206_v13 }
 0x22a   :  { %215 = vsyncpa [#allocation3], 1 }
 0x22b   :  { %216 = vsyncpa [#allocation5], 1 }

</bundles_post_ra>
